<compile_context>
chip_gen: v5e
topology: v5e:2x2
jax: 0.10.0
libtpu: 0.0.40
codegen_flags: <defaults>
</compile_context>

<pallas_src>
import functools

import jax
import jax.numpy as jnp
from jax.experimental import pallas as pl
from jax.experimental.pallas import tpu as pltpu


def _round_up(x, m):
    return ((x + m - 1) // m) * m


def _largest_divisor(dim, align, cap):
    """Largest multiple of `align` that divides `dim` and is <= cap."""
    cap = max(align, (min(cap, dim) // align) * align)
    for t in range(cap, align - 1, -align):
        if dim % t == 0:
            return t
    return align  # unreachable when align | dim


def _pick_m_tile(m_al, cap):
    """Tile along M (multiple of 8). Padding M only costs extra zero rows of x,
    so prefer cap + small padding over a pathologically small exact divisor."""
    exact = _largest_divisor(m_al, 8, cap)
    cap_t = max(8, (min(cap, m_al) // 8) * 8)
    padded = _round_up(m_al, cap_t)
    if exact * 4 >= cap_t or padded - m_al > m_al // 8:
        return exact, m_al
    return cap_t, padded


# ----------------------------- kernels --------------------------------------


def _linear_single_k_kernel(x_ref, w_ref, b_ref, o_ref):
    # One K step: output written exactly once, bias fused into the store.
    o_ref[...] = (
        jnp.dot(x_ref[...], w_ref[...], preferred_element_type=jnp.float32)
        + b_ref[...]
    ).astype(o_ref.dtype)


def _linear_multi_k_kernel(x_ref, w_ref, b_ref, o_ref):
    # Output block is K-resident (its index_map ignores k): seed it with the
    # broadcast bias at k==0, then accumulate MXU partials directly into it.
    @pl.when(pl.program_id(2) == 0)
    def _():
        o_ref[...] = jnp.broadcast_to(b_ref[...], o_ref.shape).astype(o_ref.dtype)

    o_ref[...] += jnp.dot(
        x_ref[...], w_ref[...], preferred_element_type=jnp.float32
    )


# ----------------------------- wrapper ---------------------------------------


def prepare_linear_params(weight, bias):
    """One-time layout prep — call OUTSIDE the jitted forward / train step.

    Transposes W to (indim, outdim) and zero-pads K and N to multiples of 128
    so the per-call path never touches W in HBM for layout reasons.
    """
    weight = jnp.asarray(weight, dtype=jnp.float32)
    bias = jnp.asarray(bias, dtype=jnp.float32)
    outdim, indim = weight.shape
    k_al = _round_up(indim, 128)
    n_al = _round_up(outdim, 128)
    w_p = jnp.pad(weight.T, ((0, k_al - indim), (0, n_al - outdim)))
    b_p = jnp.pad(bias.reshape(1, outdim), ((0, 0), (0, n_al - outdim)))
    return w_p, b_p


@functools.partial(
    jax.jit, static_argnames=("outdim", "tm_cap", "tn_cap", "tk_cap")
)
def linear_forward(x, w_p, b_p, outdim, *, tm_cap=512, tn_cap=512, tk_cap=1024):
    """y = x @ W^T + b with W pre-transposed/padded by prepare_linear_params.

    x:   (B, indim)    float32
    w_p: (k_al, n_al)  float32  (128-aligned padded transpose of W)
    b_p: (1, n_al)     float32
    """
    B, indim = x.shape
    k_al, n_al = w_p.shape
    m_al = _round_up(B, 8)

    # ---- static tile selection (shapes are static under jit) ----
    tm, Mp = _pick_m_tile(m_al, tm_cap)
    tn = _largest_divisor(n_al, 128, tn_cap)      # exact divisor: no W padding
    Np = n_al
    if k_al <= max(tk_cap, 2048):
        tk = k_al                                  # single K step -> 2-D grid
    else:
        tk = _largest_divisor(k_al, 128, tk_cap)   # exact divisor: no W padding
    Kp = k_al

    # Feed both TensorCores (v7x): ensure >= 2 parallel output tiles if we can.
    if (Mp // tm) * (Np // tn) < 2:
        if Mp >= 16:
            for t in range((Mp // 2) // 8 * 8, 7, -8):
                if Mp % t == 0:
                    tm = t
                    break
        elif Np >= 256:
            for t in range((Np // 2) // 128 * 128, 127, -128):
                if Np % t == 0:
                    tn = t
                    break

    # ---- pad only x (rows + contraction); W/bias were padded at prep time ----
    x_p = x
    if Mp != B or Kp != indim:
        x_p = jnp.pad(x, ((0, Mp - B), (0, Kp - indim)))

    # ---- VMEM budget: double-buffered tiles + headroom, v7x-safe clamp ----
    ws = 4 * 2 * (tm * tk + tk * tn + tm * tn + tn)
    vmem_limit = min(max(int(1.5 * ws) + (8 << 20), 32 << 20), 56 << 20)

    if tk == Kp:
        grid = (Mp // tm, Np // tn)
        kernel = _linear_single_k_kernel
        in_specs = [
            pl.BlockSpec((tm, Kp), lambda i, j: (i, 0)),   # x tile
            pl.BlockSpec((Kp, tn), lambda i, j: (0, j)),   # W^T tile
            pl.BlockSpec((1, tn), lambda i, j: (0, j)),    # bias tile
        ]
        out_specs = pl.BlockSpec((tm, tn), lambda i, j: (i, j))
        dims = ("parallel", "parallel")
    else:
        grid = (Mp // tm, Np // tn, Kp // tk)
        kernel = _linear_multi_k_kernel
        in_specs = [
            pl.BlockSpec((tm, tk), lambda i, j, k: (i, k)),   # x tile
            pl.BlockSpec((tk, tn), lambda i, j, k: (k, j)),   # W^T tile
            pl.BlockSpec((1, tn), lambda i, j, k: (0, j)),    # bias tile
        ]
        out_specs = pl.BlockSpec((tm, tn), lambda i, j, k: (i, j))
        dims = ("parallel", "parallel", "arbitrary")

    out_p = pl.pallas_call(
        kernel,
        out_shape=jax.ShapeDtypeStruct((Mp, Np), x.dtype),
        grid_spec=pltpu.PrefetchScalarGridSpec(
            num_scalar_prefetch=0,
            grid=grid,
            in_specs=in_specs,
            out_specs=out_specs,
        ),
        compiler_params=pltpu.CompilerParams(
            dimension_semantics=dims,
            vmem_limit_bytes=vmem_limit,
        ),
    )(x_p, w_p, b_p)

    if Mp == B and Np == outdim:
        return out_p
    return out_p[:B, :outdim]


def init_linear_params(key, indim, outdim, xavier_init=True):
    """Parameter init matching the module semantics.

    xavier_init=True -> xavier_normal_ weights, zero bias (like the module).
    """
    wkey, bkey = jax.random.split(key)
    if xavier_init:
        std = (2.0 / (indim + outdim)) ** 0.5
        weight = std * jax.random.normal(wkey, (outdim, indim), dtype=jnp.float32)
        bias = jnp.zeros((outdim,), dtype=jnp.float32)
    else:
        # default nn.Linear init: U(-1/sqrt(indim), 1/sqrt(indim))
        bound = 1.0 / (indim ** 0.5)
        weight = jax.random.uniform(
            wkey, (outdim, indim), minval=-bound, maxval=bound, dtype=jnp.float32
        )
        bias = jax.random.uniform(
            bkey, (outdim,), minval=-bound, maxval=bound, dtype=jnp.float32
        )
    return weight, bias


if __name__ == "__main__":
    key = jax.random.PRNGKey(0)
    xkey, pkey = jax.random.split(key)

    # 1) Module-realistic tiny layer (fc on flat features): single-block path.
    B, indim, outdim = 8, 32, 64
    x = jax.random.normal(xkey, (B, indim), dtype=jnp.float32)
    weight, bias = init_linear_params(pkey, indim, outdim, xavier_init=True)
    w_p, b_p = prepare_linear_params(weight, bias)        # one-time, outside jit
    y = linear_forward(x, w_p, b_p, outdim)
    jax.block_until_ready(y)
    y_ref = x @ weight.T + bias
    assert y.shape == (B, outdim)
    assert jnp.allclose(y, y_ref, atol=1e-5, rtol=1e-5)

    # 2) Single-K-step tiled path with multiple parallel output tiles.
    B2, in2, out2 = 256, 512, 384
    x2 = jax.random.normal(xkey, (B2, in2), dtype=jnp.float32)
    w2, b2 = init_linear_params(pkey, in2, out2, xavier_init=True)
    w2_p, b2_p = prepare_linear_params(w2, b2)
    y2 = linear_forward(x2, w2_p, b2_p, out2)
    jax.block_until_ready(y2)
    y2_ref = x2 @ w2.T + b2
    assert y2.shape == (B2, out2)
    assert jnp.allclose(y2, y2_ref, atol=1e-2, rtol=1e-2)

    # 3) Multi-K accumulation path (K > 2048 -> 3-D grid, bias-seeded o_ref).
    B3, in3, out3 = 384, 2560, 640
    x3 = jax.random.normal(xkey, (B3, in3), dtype=jnp.float32)
    w3, b3 = init_linear_params(pkey, in3, out3, xavier_init=True)
    w3_p, b3_p = prepare_linear_params(w3, b3)
    y3 = linear_forward(x3, w3_p, b3_p, out3)
    jax.block_until_ready(y3)
    y3_ref = x3 @ w3.T + b3
    assert y3.shape == (B3, out3)
    assert jnp.allclose(y3, y3_ref, atol=1e-2, rtol=1e-2)

    print("KERNEL_OK")
</pallas_src>

<mosaic_0001>
module attributes {stable_mosaic.version = 11 : i64} {
  func.func @_linear_single_k_kernel(%arg0: i32, %arg1: i32, %arg2: memref<8x128xf32, #tpu.memory_space<vmem>>, %arg3: memref<128x128xf32, #tpu.memory_space<vmem>>, %arg4: memref<1x128xf32, #tpu.memory_space<vmem>>, %arg5: memref<8x128xf32, #tpu.memory_space<vmem>>) attributes {dimension_semantics = [#tpu.dimension_semantics<parallel>, #tpu.dimension_semantics<parallel>], iteration_bounds = array<i64: 1, 1>, scalar_prefetch = 0 : i64, scratch_operands = 0 : i64, tpu.core_type = #tpu.core_type<tc>, window_params = [{transform_indices = @transform_0, window_bounds = array<i64: 8, 128>}, {transform_indices = @transform_1, window_bounds = array<i64: 128, 128>}, {transform_indices = @transform_2, window_bounds = array<i64: 1, 128>}, {transform_indices = @transform_3, window_bounds = array<i64: 8, 128>}]} {
    %c0 = arith.constant 0 : index
    %c0_0 = arith.constant 0 : index
    %0 = vector.load %arg2[%c0, %c0_0] : memref<8x128xf32, #tpu.memory_space<vmem>>, vector<8x128xf32>
    %c0_1 = arith.constant 0 : index
    %c0_2 = arith.constant 0 : index
    %1 = vector.load %arg3[%c0_1, %c0_2] : memref<128x128xf32, #tpu.memory_space<vmem>>, vector<128x128xf32>
    %cst = arith.constant dense<0.000000e+00> : vector<8x128xf32>
    %2 = tpu.matmul %0, %1, %cst {dimension_numbers = #tpu.dot_dimension_numbers<[1], [0], [0], [1], [0, 0, 1, 1], [], []>} : vector<8x128xf32>, vector<128x128xf32>, vector<8x128xf32> -> vector<8x128xf32>
    %c0_3 = arith.constant 0 : index
    %c0_4 = arith.constant 0 : index
    %3 = vector.load %arg4[%c0_3, %c0_4] : memref<1x128xf32, #tpu.memory_space<vmem>>, vector<1x128xf32>
    %4 = vector.broadcast %3 : vector<1x128xf32> to vector<8x128xf32>
    %5 = arith.addf %2, %4 : vector<8x128xf32>
    %c0_5 = arith.constant 0 : index
    %c0_6 = arith.constant 0 : index
    %6 = vector.load %arg5[%c0_5, %c0_6] : memref<8x128xf32, #tpu.memory_space<vmem>>, vector<8x128xf32>
    tpu.vector_store %arg5[%c0_5, %c0_6], %5 {strides = array<i32>} : memref<8x128xf32, #tpu.memory_space<vmem>>, vector<8x128xf32>,
    return
  }
  func.func @transform_0(%arg0: i32, %arg1: i32) -> (i32, i32) {
    %c0_i32 = arith.constant 0 : i32
    %c0_i32_0 = arith.constant 0 : i32
    return %arg0, %c0_i32 : i32, i32
  }
  func.func @transform_1(%arg0: i32, %arg1: i32) -> (i32, i32) {
    %c0_i32 = arith.constant 0 : i32
    %c0_i32_0 = arith.constant 0 : i32
    return %c0_i32, %arg1 : i32, i32
  }
  func.func @transform_2(%arg0: i32, %arg1: i32) -> (i32, i32) {
    %c0_i32 = arith.constant 0 : i32
    %c0_i32_0 = arith.constant 0 : i32
    return %c0_i32, %arg1 : i32, i32
  }
  func.func @transform_3(%arg0: i32, %arg1: i32) -> (i32, i32) {
    %c0_i32 = arith.constant 0 : i32
    return %arg0, %arg1 : i32, i32
  }
}

</mosaic_0001>

<bundles_post_ra>
// kernel: linear_forward.1
= control target key start
LH: loop header
LB: loop body
LE: loop exit
PB: predicated region body
PF: predicated region fallthrough
CT: control target
= control target key end

     0   :  { %8 = vsyncpa [#allocation3], 0  ;;  %s183_s0 = inlined_call_operand.vmem [shape: f32[8,128], index: 0, kind: input, shape index: {}]   ;;  %s184_s1 = inlined_call_operand.hbm [shape: f32[128,128], index: 1, kind: input, shape index: {}]   ;;  %s185_s2 = inlined_call_operand.vmem [shape: f32[1,128], index: 2, kind: input, shape index: {}]   ;;  %s186_s3 = inlined_call_operand.hbm [shape: f32[8,128], index: 3, kind: output, shape index: {}]  }
   0x1   :  { %9 = vsyncpa [#allocation4], 0  ;;  %s16_s14 = sshll.u32 %s184_s1, 4  ;;  %s147_s15 = smov [#allocation2]   ;;  %s17_s14 = int_to_ptr.hbm [resolvable:$true] %s16_s14 }
   0x2   :  { %s18_s16 = sshll.u32 %s147_s15, 4  ;;  %s148_s17 = smov 128   ;;  %s19_s16 = int_to_ptr.vmem [resolvable:$true] %s18_s16 }
   0x3   :  { %s149_s18 = smov 8  }
   0x4   :  { %24 = dma.hbm_to_vmem [thread:$0]  %s17_s14, 2048, %s19_s16, [#allocation3], %s148_s17, %s148_s17, %s149_s18  }
   0x5   :  { %143 = dma.done.wait [#allocation3], 2048  }
   0x6   :  { %144 = vsyncadd [#allocation3], 4294965248  ;;  %v47_v0 = vld [vmem:[#allocation2 + $0x78] sm:$0xff]  ;;  %v46_v1 = vld [vmem:[#allocation2 + $0x70] sm:$0xff]  ;;  %s150_s22 = smov [#allocation5]   ;;  %s80_s26 = sshll.u32 %s186_s3, 4  ;;  %s81_s26 = int_to_ptr.hbm [resolvable:$true] %s80_s26 }
   0x7   :  { %52 = vmatpush.msra.mxu0 %v47_v0  ;;  %v45_v2 = vld [vmem:[#allocation2 + $0x68] sm:$0xff]  ;;  %v44_v3 = vld [vmem:[#allocation2 + $0x60] sm:$0xff]  ;;  %v43_v4 = vld [vmem:[#allocation2 + $0x58] sm:$0xff]  ;;  %s78_s23 = sshll.u32 %s150_s22, 4  ;;  %s79_s23 = int_to_ptr.vmem [resolvable:$true] %s78_s23 }
   0x8   :  { %v42_v5 = vld [vmem:[#allocation2 + $0x50] sm:$0xff]  ;;  %v41_v6 = vld [vmem:[#allocation2 + $0x48] sm:$0xff]  ;;  %v40_v7 = vld [vmem:[#allocation2 + $0x40] sm:$0xff] }
   0x9   :  { %53 = vmatpush.msra.mxu0 %v46_v1  ;;  %v39_v8 = vld [vmem:[#allocation2 + $0x38] sm:$0xff]  ;;  %v38_v9 = vld [vmem:[#allocation2 + $0x30] sm:$0xff]  ;;  %v37_v10 = vld [vmem:[#allocation2 + $0x28] sm:$0xff] }
   0xa   :  { %v36_v11 = vld [vmem:[#allocation2 + $0x20] sm:$0xff]  ;;  %v35_v12 = vld [vmem:[#allocation2 + $0x18] sm:$0xff]  ;;  %v34_v13 = vld [vmem:[#allocation2 + $0x10] sm:$0xff] }
   0xb   :  { %54 = vmatpush.msra.mxu0 %v45_v2  ;;  %v33_v14 = vld [vmem:[#allocation2 + $0x8] sm:$0xff]  ;;  %v32_v15 = vld [vmem:[#allocation2] sm:$0xff] }
   0xc   :  { %v31_v16 = vld [vmem:[%s183_s0] sm:$0xff] }
   0xd   :  { %55 = vmatpush.msra.mxu0 %v44_v3  ;;  %v94_v17 = vld [vmem:[%s185_s2] ss:$0 sm:$0xff] }
   0xf   :  { %56 = vmatpush.msra.mxu0 %v43_v4 }
  0x11   :  { %57 = vmatpush.msra.mxu0 %v42_v5 }
  0x13   :  { %58 = vmatpush.msra.mxu0 %v41_v6 }
  0x15   :  { %59 = vmatpush.msra.mxu0 %v40_v7 }
  0x17   :  { %60 = vmatpush.msra.mxu0 %v39_v8 }
  0x19   :  { %61 = vmatpush.msra.mxu0 %v38_v9 }
  0x1b   :  { %62 = vmatpush.msra.mxu0 %v37_v10 }
  0x1d   :  { %63 = vmatpush.msra.mxu0 %v36_v11 }
  0x1f   :  { %64 = vmatpush.msra.mxu0 %v35_v12 }
  0x21   :  { %65 = vmatpush.msra.mxu0 %v34_v13 }
  0x23   :  { %66 = vmatpush.msra.mxu0 %v33_v14 }
  0x25   :  { %67 = vmatpush.msra.mxu0 %v32_v15 }
  0x26   :  { %68 = vmatmul.f32.vlgmr.msra.gmra.mxu0 %v31_v16 }
  0xa3   :  { %v69_v18 = vpop.f32.mrf.mxu0 }
  0xa4   :  { %v70_v19 = vadd.f32 %v94_v17, %v69_v18 }
  0xa6   :  { %72 = vst [vmem:[#allocation5] sm:$0xff] %v70_v19 }
  0xa7   :  { %83 = dma.vmem_to_hbm [thread:$0]  %s79_s23, 128, %s81_s26, [#allocation4]  }
  0xa8   :  { %145 = dma.done.wait [#allocation4], 128  }
  0xa9   :  { %146 = vsyncadd [#allocation4], 4294967168 }
  0xaa   :  { %88 = vsyncpa [#allocation3], 1 }
  0xab   :  { %89 = vsyncpa [#allocation4], 1 }

</bundles_post_ra>
